<compile_context>
chip_gen: v6e
topology: v6e:2x2x1
jax: 0.10.0
libtpu: 0.0.40
codegen_flags: <defaults>
</compile_context>

<pallas_src>
import math

import jax
import jax.numpy as jnp
from jax import lax
from jax.experimental import pallas as pl
from jax.experimental.pallas import tpu as pltpu  # noqa: F401  (TPU backend namespace)


# ----------------------------- Pallas kernel -----------------------------

def embedding_kernel(tok_ref, pos_ref, fused_ref, o_ref):
    """tok_ref:   (BT, 1) int32  -- token id per flattened (batch, position) row
       pos_ref:   (BT, 1) int32  -- V + (row % T): row index into the PE half of fused table
       fused_ref: (V+T, E) f32   -- concat(embedding_table, pe[:T]) along rows
       o_ref:     (BT, E) f32
    """
    bt = tok_ref.shape[0]
    vt = fused_ref.shape[0]

    # Two-hot selection matrix with weight 2.0 on the MXU:
    #   row i picks 2*table[ids[i]] + 2*pe[i % T]  ==  2 * (emb + pe)  (exact in f32,
    #   since all other contraction terms are exactly 0.0).
    col = lax.broadcasted_iota(jnp.int32, (bt, vt), 1)
    hot = jnp.logical_or(col == tok_ref[...], col == pos_ref[...])
    sel = jnp.where(hot, jnp.float32(2.0), jnp.float32(0.0))

    # Dropout is identity in eval-mode forward.
    o_ref[...] = jnp.dot(sel, fused_ref[...], preferred_element_type=jnp.float32)


# ----------------------------- wrapper -----------------------------

def embedding_forward(ids, table, pe):
    """ids: (B, T) int32 token ids; table: (V, E) f32; pe: (context_size, E) f32 -> (B, T, E)."""
    B, T = ids.shape
    V, E = table.shape
    BT = B * T

    tok = ids.reshape(BT, 1).astype(jnp.int32)
    # Position row -> index of its PE row inside the fused table (offset by V).
    pos = (V + (jnp.arange(BT, dtype=jnp.int32) % T)).reshape(BT, 1)
    # Fused lookup table: embedding rows followed by the T positional-encoding rows.
    fused_table = jnp.concatenate([table, pe[:T]], axis=0).astype(jnp.float32)  # (V+T, E)

    out = pl.pallas_call(
        embedding_kernel,
        out_shape=jax.ShapeDtypeStruct((BT, E), jnp.float32),
    )(tok, pos, fused_table)
    return out.reshape(B, T, E)


# ----------------------------- buffers / params -----------------------------

def make_positional_encoding(context_size, d_model):
    # Mirrors the PositionalEncoding buffer construction.
    position = jnp.arange(context_size, dtype=jnp.float32)[:, None]
    div_term = jnp.exp(
        jnp.arange(0, d_model, 2, dtype=jnp.float32) * (-math.log(10000.0) / d_model)
    )
    ang = position * div_term                                   # (T, ceil(E/2))
    pe = jnp.zeros((context_size, d_model), jnp.float32)
    pe = pe.at[:, 0::2].set(jnp.sin(ang))
    pe = pe.at[:, 1::2].set(jnp.cos(ang[:, : d_model // 2]))
    return pe


# ----------------------------- pure-JAX reference -----------------------------

def reference(ids, table, pe):
    emb = table[ids]                                            # (B, T, E)
    return 2.0 * (emb + pe[None, : ids.shape[1], :])            # dropout == identity (eval)


# ----------------------------- main -----------------------------

if __name__ == "__main__":
    # vocab_size=128, embedding_dim=32, context_size=8, batch=2 (dropout eval -> identity)
    B, T, E, V = 2, 8, 32, 128
    key = jax.random.PRNGKey(0)
    k_ids, k_tab = jax.random.split(key)

    ids = jax.random.randint(k_ids, (B, T), 0, V, dtype=jnp.int32)
    table = jax.random.normal(k_tab, (V, E), jnp.float32)       # nn.Embedding default N(0, 1)
    pe = make_positional_encoding(T, E)

    out = embedding_forward(ids, table, pe)
    out = jax.block_until_ready(out)

    ref = reference(ids, table, pe)
    assert out.shape == (B, T, E)
    assert bool(jnp.all(jnp.isfinite(out)))
    assert bool(jnp.allclose(out, ref, atol=1e-5, rtol=1e-5)), "mismatch vs reference"
    # TODO(synk): training-mode dropout (RNG masking) would use pltpu.prng_seed /
    # prng_random_bits; forward here follows eval semantics (identity).
    print("KERNEL_OK")
</pallas_src>

<mosaic_0001>
module attributes {stable_mosaic.version = 11 : i64} {
  func.func @embedding_kernel(%arg0: memref<16x1xi32, #tpu.memory_space<vmem>>, %arg1: memref<16x1xi32, #tpu.memory_space<vmem>>, %arg2: memref<136x32xf32, #tpu.memory_space<vmem>>, %arg3: memref<16x32xf32, #tpu.memory_space<vmem>>) attributes {dimension_semantics = [], scalar_prefetch = 0 : i64, scratch_operands = 0 : i64, tpu.core_type = #tpu.core_type<tc>} {
    %0 = tpu.iota {dimensions = array<i32: 1>} : vector<16x136xi32>
    %c0 = arith.constant 0 : index
    %c0_0 = arith.constant 0 : index
    %1 = vector.load %arg0[%c0, %c0_0] : memref<16x1xi32, #tpu.memory_space<vmem>>, vector<16x1xi32>
    %2 = vector.broadcast %1 : vector<16x1xi32> to vector<16x136xi32>
    %3 = arith.cmpi eq, %0, %2 : vector<16x136xi32>
    %c0_1 = arith.constant 0 : index
    %c0_2 = arith.constant 0 : index
    %4 = vector.load %arg1[%c0_1, %c0_2] : memref<16x1xi32, #tpu.memory_space<vmem>>, vector<16x1xi32>
    %5 = vector.broadcast %4 : vector<16x1xi32> to vector<16x136xi32>
    %6 = arith.cmpi eq, %0, %5 : vector<16x136xi32>
    %7 = arith.ori %3, %6 : vector<16x136xi1>
    %cst = arith.constant 2.000000e+00 : f32
    %cst_3 = arith.constant 0.000000e+00 : f32
    %8 = vector.broadcast %cst : f32 to vector<16x136xf32>
    %9 = vector.broadcast %cst_3 : f32 to vector<16x136xf32>
    %10 = arith.select %7, %8, %9 : vector<16x136xi1>, vector<16x136xf32>
    %c0_4 = arith.constant 0 : index
    %c0_5 = arith.constant 0 : index
    %11 = vector.load %arg2[%c0_4, %c0_5] : memref<136x32xf32, #tpu.memory_space<vmem>>, vector<136x32xf32>
    %cst_6 = arith.constant dense<0.000000e+00> : vector<16x32xf32>
    %12 = tpu.matmul %10, %11, %cst_6 {dimension_numbers = #tpu.dot_dimension_numbers<[1], [0], [0], [1], [0, 0, 1, 1], [], []>} : vector<16x136xf32>, vector<136x32xf32>, vector<16x32xf32> -> vector<16x32xf32>
    %c0_7 = arith.constant 0 : index
    %c0_8 = arith.constant 0 : index
    %13 = vector.load %arg3[%c0_7, %c0_8] : memref<16x32xf32, #tpu.memory_space<vmem>>, vector<16x32xf32>
    tpu.vector_store %arg3[%c0_7, %c0_8], %12 {strides = array<i32>} : memref<16x32xf32, #tpu.memory_space<vmem>>, vector<16x32xf32>,
    return
  }
}

</mosaic_0001>

<bundles_post_ra>
// kernel: tpu_custom_call.1
= control target key start
LH: loop header
LB: loop body
LE: loop exit
PB: predicated region body
PF: predicated region fallthrough
CT: control target
= control target key end

     0   :  { %v236_v2 = vmov 0   ;;  %v237_v6 = vmov 0.0   ;;  %s366_s0 = inlined_call_operand.vmem [shape: s32[16,1], index: 0, kind: input, shape index: {}]   ;;  %s367_s1 = inlined_call_operand.vmem [shape: s32[16,1], index: 1, kind: input, shape index: {}]   ;;  %s368_s2 = inlined_call_operand.vmem [shape: f32[136,32], index: 2, kind: input, shape index: {}]   ;;  %s369_s3 = inlined_call_operand.hbm [shape: f32[16,32], index: 3, kind: output, shape index: {}]  }
   0x1   :  { %v30_v0 = vld [vmem:[%s367_s1] sm:$0xff]  ;;  %213 = vset.pattern.permute.xlu1 %v236_v2  ;;  %212 = vset.pattern.permute.xlu0 %v236_v2  ;;  %v65_v3 = vld [vmem:[%s368_s2 + $0x78] sm:$0xff]  ;;  %v31_v4 = vld [vmem:[%s367_s1 + $0x8] sm:$0xff] }
   0x2   :  { %v18_v1 = vld [vmem:[%s366_s0] sm:$0xff]  ;;  %33 = vperm.xlu1 %213, %v30_v0   ;;  %v19_v5 = vld [vmem:[%s366_s0 + $0x8] sm:$0xff]  ;;  %74 = vmatprep.subr.mxu0 %v237_v6  ;;  %v64_v7 = vld [vmem:[%s368_s2 + $0x70] sm:$0xff] }
   0x3   :  { %21 = vperm.xlu0 %212, %v18_v1   ;;  %172 = vmatprep.subr.mxu1 %v237_v6  ;;  %v63_v8 = vld [vmem:[%s368_s2 + $0x68] sm:$0xff] }
   0x4   :  { %75 = vmatpush1.msra.mxu0 %v65_v3  ;;  %189 = vmatpush1.msra.mxu1 %v65_v3 }
   0x5   :  { %76 = vmatprep.subr.mxu0 %v237_v6  ;;  %173 = vmatprep.subr.mxu1 %v237_v6 }
   0x6   :  { %36 = vperm.xlu1 %213, %v31_v4   ;;  %77 = vmatpush1.msra.mxu0 %v64_v7 }
   0x7   :  { %24 = vperm.xlu0 %212, %v19_v5   ;;  %190 = vmatpush1.msra.mxu1 %v64_v7 }
   0x8   :  { %8 = vsyncpa [#allocation3], 0  ;;  %78 = vmatprep.subr.mxu0 %v237_v6  ;;  %v62_v9 = vld [vmem:[%s368_s2 + $0x60] sm:$0xff]  ;;  %174 = vmatprep.subr.mxu1 %v237_v6  ;;  %v61_v10 = vld [vmem:[%s368_s2 + $0x58] sm:$0xff]  ;;  %v15_v23 = vlaneseq  ;;  %vm67_vm4 = vcmask 64512   ;;  %v238_v31 = vmov 2.0  }
   0x9   :  { %79 = vmatpush1.msra.mxu0 %v63_v8  ;;  %191 = vmatpush1.msra.mxu1 %v63_v8  ;;  %v60_v11 = vld [vmem:[%s368_s2 + $0x50] sm:$0xff]  ;;  %v59_v12 = vld [vmem:[%s368_s2 + $0x48] sm:$0xff]  ;;  %v58_v13 = vld [vmem:[%s368_s2 + $0x40] sm:$0xff]  ;;  %vm149_vm13 = vcmask 261120  }
   0xa   :  { %80 = vmatprep.subr.mxu0 %v237_v6  ;;  %175 = vmatprep.subr.mxu1 %v237_v6  ;;  %v57_v14 = vld [vmem:[%s368_s2 + $0x38] sm:$0xff]  ;;  %v56_v15 = vld [vmem:[%s368_s2 + $0x30] sm:$0xff]  ;;  %v55_v16 = vld [vmem:[%s368_s2 + $0x28] sm:$0xff]  ;;  %v16_v24 = vand.u32 127, %v15_v23 }
   0xb   :  { %81 = vmatpush1.msra.mxu0 %v62_v9  ;;  %192 = vmatpush1.msra.mxu1 %v62_v9  ;;  %v54_v17 = vld [vmem:[%s368_s2 + $0x20] sm:$0xff]  ;;  %v53_v18 = vld [vmem:[%s368_s2 + $0x18] sm:$0xff]  ;;  %v52_v19 = vld [vmem:[%s368_s2 + $0x10] sm:$0xff] }
   0xc   :  { %82 = vmatprep.subr.mxu0 %v237_v6  ;;  %176 = vmatprep.subr.mxu1 %v237_v6  ;;  %v51_v20 = vld [vmem:[%s368_s2 + $0x8] sm:$0xff]  ;;  %v50_v21 = vld [vmem:[%s368_s2] sm:$0xff]  ;;  %v17_v25 = vadd.s32 128, %v16_v24 }
   0xd   :  { %83 = vmatpush1.msra.mxu0 %v61_v10  ;;  %193 = vmatpush1.msra.mxu1 %v61_v10  ;;  %v66_v22 = vld [vmem:[%s368_s2 + $0x80] sm:$0xff]  ;;  %s239_s2 = smov [#allocation2]  }
   0xe   :  { %84 = vmatprep.subr.mxu0 %v237_v6  ;;  %177 = vmatprep.subr.mxu1 %v237_v6  ;;  %s157_s24 = sshll.u32 %s239_s2, 4  ;;  %s158_s24 = int_to_ptr.vmem [resolvable:$true] %s157_s24 }
   0xf   :  { %85 = vmatpush1.msra.mxu0 %v60_v11  ;;  %194 = vmatpush1.msra.mxu1 %v60_v11  ;;  %s214_s0 = scalar_lea.vmem %s158_s24, 256  ;;  %p219_p1 = scmp.lt.s32.totalorder %s158_s24, %s158_s24 }
  0x10   :  { %86 = vmatprep.subr.mxu0 %v237_v6  ;;  %178 = vmatprep.subr.mxu1 %v237_v6  ;;  %p215_p0 = scmp.ne.s32.totalorder %s158_s24, %s214_s0  ;;  %p220_p2 = scmp.lt.s32.totalorder %s214_s0, %s214_s0 }
  0x11   :  { %87 = vmatpush1.msra.mxu0 %v59_v12  ;;  %195 = vmatpush1.msra.mxu1 %v59_v12 }
  0x12   :  { %88 = vmatprep.subr.mxu0 %v237_v6  ;;  %179 = vmatprep.subr.mxu1 %v237_v6  ;;  %p221_p3 = por %p220_p2, %p219_p1 }
  0x13   :  { %89 = vmatpush1.msra.mxu0 %v58_v13  ;;  %196 = vmatpush1.msra.mxu1 %v58_v13 }
  0x14   :  { %90 = vmatprep.subr.mxu0 %v237_v6  ;;  %180 = vmatprep.subr.mxu1 %v237_v6  ;;  %p222_p4 = pnand %p221_p3, %p215_p0 }
  0x15   :  { %91 = vmatpush1.msra.mxu0 %v57_v14  ;;  %197 = vmatpush1.msra.mxu1 %v57_v14 }
  0x16   :  { %92 = vmatprep.subr.mxu0 %v237_v6  ;;  %181 = vmatprep.subr.mxu1 %v237_v6 }
  0x17   :  { %93 = vmatpush1.msra.mxu0 %v56_v15  ;;  %198 = vmatpush1.msra.mxu1 %v56_v15 }
  0x18   :  { %94 = vmatprep.subr.mxu0 %v237_v6  ;;  %182 = vmatprep.subr.mxu1 %v237_v6 }
  0x19   :  { %95 = vmatpush1.msra.mxu0 %v55_v16  ;;  %199 = vmatpush1.msra.mxu1 %v55_v16 }
  0x1a   :  { %96 = vmatprep.subr.mxu0 %v237_v6  ;;  %183 = vmatprep.subr.mxu1 %v237_v6 }
  0x1b   :  { %97 = vmatpush1.msra.mxu0 %v54_v17  ;;  %200 = vmatpush1.msra.mxu1 %v54_v17 }
  0x1c   :  { %98 = vmatprep.subr.mxu0 %v237_v6  ;;  %184 = vmatprep.subr.mxu1 %v237_v6 }
  0x1d   :  { %99 = vmatpush1.msra.mxu0 %v53_v18  ;;  %201 = vmatpush1.msra.mxu1 %v53_v18 }
  0x1e   :  { %100 = vmatprep.subr.mxu0 %v237_v6  ;;  %185 = vmatprep.subr.mxu1 %v237_v6 }
  0x1f   :  { %101 = vmatpush1.msra.mxu0 %v52_v19  ;;  %202 = vmatpush1.msra.mxu1 %v52_v19 }
  0x20   :  { %102 = vmatprep.subr.mxu0 %v237_v6  ;;  %186 = vmatprep.subr.mxu1 %v237_v6 }
  0x21   :  { %103 = vmatpush1.msra.mxu0 %v51_v20  ;;  %203 = vmatpush1.msra.mxu1 %v51_v20 }
  0x22   :  { %104 = vmatprep.subr.mxu0 %v237_v6  ;;  %187 = vmatprep.subr.mxu1 %v237_v6 }
  0x23   :  { %105 = vmatpush1.msra.mxu0 %v50_v21  ;;  %204 = vmatpush1.msra.mxu1 %v50_v21 }
  0x24   :  { %136 = vmatprep.subr.mxu0 %v237_v6  ;;  %188 = vmatprep.subr.mxu1 %v237_v6 }
  0x25   :  { %137 = vmatpush2.msra.mxu0 %v66_v22  ;;  %205 = vmatpush2.msra.mxu1 %v66_v22 }
  0x7d   :  { %v34_v26 = vpop.permute.xlu1 %33 }
  0x7e   :  { %v22_v27 = vpop.permute.xlu0 %21  ;;  %vm39_vm0 = vcmp.eq.s32.totalorder %v17_v25, %v34_v26  ;;  %vm38_vm2 = vcmp.eq.s32.totalorder %v16_v24, %v34_v26 }
  0x7f   :  { %vm27_vm1 = vcmp.eq.s32.totalorder %v17_v25, %v22_v27  ;;  %vm26_vm3 = vcmp.eq.s32.totalorder %v16_v24, %v22_v27 }
  0x80   :  { %vm43_vm5 = vmor %vm27_vm1, %vm39_vm0 }
  0x81   :  { %v37_v28 = vpop.permute.xlu1 %36  ;;  %v47_v30 = vsel %vm43_vm5, 2.0, %v237_v6  ;;  %vm42_vm6 = vmor %vm26_vm3, %vm38_vm2 }
  0x82   :  { %v25_v29 = vpop.permute.xlu0 %24  ;;  %vm41_vm7 = vcmp.eq.s32.totalorder %v17_v25, %v37_v28  ;;  %168 = vmatprep.mubr.msk.f32.mxu0 %vm67_vm4, %v47_v30  ;;  %vm40_vm9 = vcmp.eq.s32.totalorder %v16_v24, %v37_v28 }
  0x83   :  { %vm29_vm8 = vcmp.eq.s32.totalorder %v17_v25, %v25_v29  ;;  %vm28_vm10 = vcmp.eq.s32.totalorder %v16_v24, %v25_v29  ;;  %169 = vmatmul.mubr.msk.f32.vlgmr.msra.gmra.mxu0 %vm42_vm6, %v238_v31 }
  0x84   :  { %vm45_vm11 = vmor %vm29_vm8, %vm41_vm7 }
  0x85   :  { %v49_v32 = vsel %vm45_vm11, 2.0, %v237_v6  ;;  %vm44_vm12 = vmor %vm28_vm10, %vm40_vm9 }
  0x86   :  { %170 = vmatprep.mubr.msk.f32.mxu1 %vm67_vm4, %v49_v32 }
  0x87   :  { %171 = vmatmul.mubr.msk.f32.vlgmr.msra.gmra.mxu1 %vm44_vm12, %v238_v31 }
 0x143   :  { %v140_v33 = vpop.f32.mrf.mxu0 }
 0x144   :  { %150 = vst.msk [vmem:[#allocation2] sm:$0xff] %vm149_vm13, %v140_v33 }
 0x145   :  { %v142_v34 = vpop.f32.mrf.mxu0 }
 0x147   :  { %v145_v35 = vpop.f32.mrf.mxu1 }
 0x148   :  { %151 = vst.msk [vmem:[#allocation2 + $0x8] sm:$0xff] %vm149_vm13, %v145_v35 }
 0x149   :  { %v147_v36 = vpop.f32.mrf.mxu1 }
 0x14a   :  { %225 = shalt.err (!%p222_p4)
}
 0x14b   :  { %s240_s25 = smov 128   ;;  %s241_s26 = smov 8  }
 0x14c   :  { %163 = dma.vmem_to_hbm [thread:$0]  %s158_s24, 256, %s369_s3, [#allocation3], %s240_s25, %s240_s25, %s241_s26  }
 0x14d   :  { %234 = dma.done.wait [#allocation3], 256  }
 0x14e   :  { %235 = vsyncadd [#allocation3], 4294967040 }
 0x14f   :  { %167 = vsyncpa [#allocation3], 1 }

</bundles_post_ra>
